<compile_context>
chip_gen: v5e
topology: v5e:2x2
jax: 0.10.0
libtpu: 0.0.40
codegen_flags: <defaults>
</compile_context>

<pallas_src>
import numpy as np
import jax
import jax.numpy as jnp
from jax.experimental import pallas as pl
from jax.experimental.pallas import tpu as pltpu


# ---------------------------------------------------------------------------
# Exact matrices for AdaptiveAvgPool2d and bilinear interp (align_corners=True)
# (built in float64; cast to the compute dtype only after composition)
# ---------------------------------------------------------------------------
def adaptive_pool_matrix(in_size: int, out_size: int) -> np.ndarray:
    """Row i averages input indices [floor(i*I/O), ceil((i+1)*I/O))."""
    m = np.zeros((out_size, in_size), dtype=np.float64)
    for i in range(out_size):
        start = (i * in_size) // out_size
        end = -((-(i + 1) * in_size) // out_size)  # ceil((i+1)*I/O)
        m[i, start:end] = 1.0 / float(end - start)
    return m


def bilinear_matrix(in_size: int, out_size: int) -> np.ndarray:
    """Bilinear interpolation weights with align_corners=True semantics."""
    m = np.zeros((out_size, in_size), dtype=np.float64)
    if out_size == 1:
        m[0, 0] = 1.0  # matches PyTorch align_corners=True, output_size==1
        return m
    scale = (in_size - 1) / (out_size - 1)
    for i in range(out_size):
        src = i * scale
        lo = int(np.floor(src))
        hi = min(lo + 1, in_size - 1)
        w = src - lo
        m[i, lo] += 1.0 - w
        m[i, hi] += w
    return m


def _round_up(x: int, m: int) -> int:
    return ((x + m - 1) // m) * m


# ---------------------------------------------------------------------------
# Generation-aware VMEM budget (v7x has only 64 MiB physical per TensorCore).
# ---------------------------------------------------------------------------
def _vmem_limit_bytes() -> int:
    phys = 64 << 20  # conservative default = v7x per-TensorCore VMEM
    try:
        cap = getattr(pltpu.get_tpu_info(), "vmem_capacity_bytes", None)
        if cap:
            phys = int(cap)
    except Exception:
        pass
    # leave ~25% for compiler internal scratch; never ask for more than 96 MiB
    return int(min((phys * 3) // 4, 96 << 20))


# ---------------------------------------------------------------------------
# Pallas kernel: one MXU matmul per block of rows.
#   x_ref : (B, K)   lane-dense row block
#   w_ref : (K, Np)  constant weight tile (same every grid step)
#   o_ref : (B, Np)  lane-dense output block (Np is a multiple of 128)
# ---------------------------------------------------------------------------
def _matmul_kernel(x_ref, w_ref, o_ref):
    o_ref[...] = jnp.dot(
        x_ref[...], w_ref[...], preferred_element_type=jnp.float32
    ).astype(o_ref.dtype)


def _blocked_matmul(x2d: jax.Array, w_np: np.ndarray, out_dtype) -> jax.Array:
    """out = x2d @ w, row-blocked over a 1-D 'parallel' grid."""
    r, k = x2d.shape
    kk, ncols = w_np.shape
    assert kk == k
    in_item = np.dtype(x2d.dtype).itemsize
    out_item = np.dtype(out_dtype).itemsize

    # Lane-dense output: zero-pad weight columns to a multiple of 128 so the
    # stores are unmasked vst (extra columns are sliced off by the caller).
    ncols_p = _round_up(ncols, 128)
    if ncols_p != ncols:
        w_np = np.concatenate(
            [w_np, np.zeros((k, ncols_p - ncols), dtype=w_np.dtype)], axis=1
        )
    w_dev = jnp.asarray(np.ascontiguousarray(w_np), dtype=x2d.dtype)

    vmem_limit = _vmem_limit_bytes()
    # The weight tile has a constant index_map but is still double-buffered by
    # the BlockSpec pipeline, so budget for 2 copies.  (pipeline_mode=
    # pl.Buffered(1) would halve this once single-buffering is relied upon.)
    w_bytes = 2 * k * ncols_p * in_item
    if w_bytes > vmem_limit // 2:
        raise ValueError("weight matrix too large for VMEM")

    headroom = 2 << 20
    blk_budget = min(vmem_limit - w_bytes - headroom, 40 << 20)  # 2x(in+out) blocks
    per_row = k * in_item + ncols_p * out_item
    sub = 8 if in_item >= 4 else 16  # sublane packing (16 for bf16)

    b = min(4096, max(sub, blk_budget // (2 * per_row)), r)
    if b >= r:
        b = r                               # single full-extent block: always legal
    else:
        b = max(sub, (b // sub) * sub)      # keep full sublanes in the block
    grid_len = pl.cdiv(r, b)

    # Give each of (up to) 2 TensorCores at least 2 pipelined steps when there
    # is enough work (v7x megacore: 1 step/core exposes the prologue DMA).
    if grid_len < 4 and r >= 4 * sub:
        b = min(b, _round_up(pl.cdiv(r, 4), sub))
        grid_len = pl.cdiv(r, b)
    # Prefer an even (per-core balanced) small grid.
    if 1 < grid_len <= 8 and grid_len % 2 == 1:
        b2 = _round_up(pl.cdiv(r, grid_len + 1), sub)
        if b2 >= sub and pl.cdiv(r, b2) % 2 == 0:
            b, grid_len = b2, pl.cdiv(r, b2)

    cost = pl.CostEstimate(
        flops=2 * r * k * ncols_p,
        transcendentals=0,
        bytes_accessed=r * k * in_item + k * ncols_p * in_item + r * ncols_p * out_item,
    )

    out = pl.pallas_call(
        _matmul_kernel,
        out_shape=jax.ShapeDtypeStruct((r, ncols_p), out_dtype),
        grid_spec=pltpu.PrefetchScalarGridSpec(
            num_scalar_prefetch=0,
            grid=(grid_len,),
            in_specs=[
                pl.BlockSpec((b, k), lambda i: (i, 0)),
                # constant weight tile: same block every grid step
                pl.BlockSpec((k, ncols_p), lambda i: (0, 0)),
            ],
            out_specs=pl.BlockSpec((b, ncols_p), lambda i: (i, 0)),
        ),
        compiler_params=pltpu.CompilerParams(
            dimension_semantics=("parallel",),
            vmem_limit_bytes=int(vmem_limit),
        ),
        cost_estimate=cost,
    )(x2d, w_dev)

    if ncols_p != ncols:
        out = out[:, :ncols]
    return out


# ---------------------------------------------------------------------------
# PyramidPooling forward.
# ---------------------------------------------------------------------------
def pyramid_pooling(x: jax.Array, pool_size: int, output_size: int,
                    *, use_bf16: bool = False) -> jax.Array:
    """x: (N, C, H, W) float32 -> (N, C, output_size, output_size)."""
    n, c, h, w = x.shape
    oh = ow = output_size
    hw, ohow = h * w, oh * ow
    nc = n * c

    # Per-axis linear maps, composed exactly in float64.
    mh = bilinear_matrix(pool_size, oh) @ adaptive_pool_matrix(h, pool_size)  # (OH, H)
    mw = bilinear_matrix(pool_size, ow) @ adaptive_pool_matrix(w, pool_size)  # (OW, W)

    # bf16 inputs/weights roughly double bandwidth on v6e/v7x (tolerance ~1e-2);
    # kept off by default to preserve the 1e-5 correctness check.
    compute_dtype = jnp.bfloat16 if use_bf16 else jnp.float32
    itemsize = 2 if use_bf16 else 4
    vmem_limit = _vmem_limit_bytes()

    # Fused path guard:
    #   (a) the kron weight (double-buffered) must fit comfortably in VMEM;
    #   (b) the kron fusion multiplies FLOPs by ~OH*OW/OH, so for large spatial
    #       sizes the fused kernel flips MXU-bound (worst on v5e) -> use the
    #       separable path beyond ~224 flops/byte.
    ohow_p = _round_up(ohow, 128)
    kt_vmem = 2 * hw * ohow_p * itemsize
    fused_intensity = (2.0 * hw * ohow) / (itemsize * (hw + ohow))
    use_fused = (kt_vmem <= vmem_limit // 4) and (fused_intensity <= 224.0)

    if use_fused:
        # out = Mh @ X @ Mw^T  <=>  vec_row(out) = kron(Mh, Mw) @ vec_row(X)
        kt = np.kron(mh, mw).T                                   # (H*W, OH*OW)
        x_flat = x.reshape(nc, hw).astype(compute_dtype)         # free reshape
        out_flat = _blocked_matmul(x_flat, kt, out_dtype=x.dtype)
        return out_flat.reshape(n, c, oh, ow)

    # Separable fallback: apply Mw along W, then Mh along H, as two plain
    # blocked matmuls with the intermediate transposed by XLA in HBM.
    y = _blocked_matmul(x.reshape(nc * h, w).astype(compute_dtype), mw.T,
                        out_dtype=jnp.float32)                   # (NC*H, OW)
    y = jnp.swapaxes(y.reshape(nc, h, ow), 1, 2).reshape(nc * ow, h)
    out = _blocked_matmul(y, mh.T, out_dtype=x.dtype)            # (NC*OW, OH)
    return jnp.swapaxes(out.reshape(nc, ow, oh), 1, 2).reshape(n, c, oh, ow)


# ---------------------------------------------------------------------------
# Pure-JAX reference (un-fused, full-precision f32 contractions).
# ---------------------------------------------------------------------------
def _reference(x, pool_size, output_size):
    _, _, h, w = x.shape
    ph = jnp.asarray(adaptive_pool_matrix(h, pool_size), dtype=jnp.float32)
    pw = jnp.asarray(adaptive_pool_matrix(w, pool_size), dtype=jnp.float32)
    uh = jnp.asarray(bilinear_matrix(pool_size, output_size), dtype=jnp.float32)
    uw = jnp.asarray(bilinear_matrix(pool_size, output_size), dtype=jnp.float32)
    hp = jax.lax.Precision.HIGHEST
    pooled = jnp.einsum("ph,nchw,qw->ncpq", ph, x, pw, precision=hp)
    return jnp.einsum("op,ncpq,rq->ncor", uh, pooled, uw, precision=hp)


if __name__ == "__main__":
    key = jax.random.PRNGKey(0)

    # Case 1 (reviewed shape): fused kron-matmul path.
    N, C, H, W = 2, 4, 16, 16
    POOL_SIZE, OUTPUT_SIZE = 4, 16
    x = jax.random.normal(key, (N, C, H, W), dtype=jnp.float32)
    out = jax.block_until_ready(pyramid_pooling(x, POOL_SIZE, OUTPUT_SIZE))
    ref = _reference(x, POOL_SIZE, OUTPUT_SIZE)
    assert out.shape == (N, C, OUTPUT_SIZE, OUTPUT_SIZE)
    np.testing.assert_allclose(np.asarray(out), np.asarray(ref), rtol=1e-5, atol=1e-5)

    # Case 2: larger spatial size -> exercises the separable two-matmul
    # fallback, lane padding of the output columns, and a ragged row tail.
    N2, C2, H2, W2 = 3, 3, 40, 40
    POOL2, OUT2 = 8, 64
    x2 = jax.random.normal(jax.random.fold_in(key, 1), (N2, C2, H2, W2),
                           dtype=jnp.float32)
    out2 = jax.block_until_ready(pyramid_pooling(x2, POOL2, OUT2))
    ref2 = _reference(x2, POOL2, OUT2)
    assert out2.shape == (N2, C2, OUT2, OUT2)
    np.testing.assert_allclose(np.asarray(out2), np.asarray(ref2), rtol=1e-4, atol=1e-5)

    print("KERNEL_OK")
</pallas_src>

<mosaic_0001>
module attributes {stable_mosaic.version = 11 : i64} {
  func.func @_matmul_kernel(%arg0: i32, %arg1: memref<8x256xf32, #tpu.memory_space<vmem>>, %arg2: memref<256x256xf32, #tpu.memory_space<vmem>>, %arg3: memref<8x256xf32, #tpu.memory_space<vmem>>) attributes {dimension_semantics = [#tpu.dimension_semantics<parallel>], iteration_bounds = array<i64: 1>, scalar_prefetch = 0 : i64, scratch_operands = 0 : i64, tpu.core_type = #tpu.core_type<tc>, window_params = [{transform_indices = @transform_0, window_bounds = array<i64: 8, 256>}, {pipeline_mode = #tpu.pipeline_mode<synchronous>, transform_indices = @transform_1, window_bounds = array<i64: 256, 256>}, {transform_indices = @transform_2, window_bounds = array<i64: 8, 256>}]} {
    %c0 = arith.constant 0 : index
    %c0_0 = arith.constant 0 : index
    %0 = vector.load %arg1[%c0, %c0_0] : memref<8x256xf32, #tpu.memory_space<vmem>>, vector<8x256xf32>
    %c0_1 = arith.constant 0 : index
    %c0_2 = arith.constant 0 : index
    %1 = vector.load %arg2[%c0_1, %c0_2] : memref<256x256xf32, #tpu.memory_space<vmem>>, vector<256x256xf32>
    %cst = arith.constant dense<0.000000e+00> : vector<8x256xf32>
    %2 = tpu.matmul %0, %1, %cst {dimension_numbers = #tpu.dot_dimension_numbers<[1], [0], [0], [1], [0, 0, 1, 1], [], []>} : vector<8x256xf32>, vector<256x256xf32>, vector<8x256xf32> -> vector<8x256xf32>
    %c0_3 = arith.constant 0 : index
    %c0_4 = arith.constant 0 : index
    %3 = vector.load %arg3[%c0_3, %c0_4] : memref<8x256xf32, #tpu.memory_space<vmem>>, vector<8x256xf32>
    tpu.vector_store %arg3[%c0_3, %c0_4], %2 {strides = array<i32>} : memref<8x256xf32, #tpu.memory_space<vmem>>, vector<8x256xf32>,
    return
  }
  func.func @transform_0(%arg0: i32) -> (i32, i32) {
    %c0_i32 = arith.constant 0 : i32
    %c0_i32_0 = arith.constant 0 : i32
    return %arg0, %c0_i32 : i32, i32
  }
  func.func @transform_1(%arg0: i32) -> (i32, i32) {
    %c0_i32 = arith.constant 0 : i32
    %c0_i32_0 = arith.constant 0 : i32
    %c0_i32_1 = arith.constant 0 : i32
    return %c0_i32, %c0_i32_0 : i32, i32
  }
  func.func @transform_2(%arg0: i32) -> (i32, i32) {
    %c0_i32 = arith.constant 0 : i32
    %c0_i32_0 = arith.constant 0 : i32
    return %arg0, %c0_i32 : i32, i32
  }
}

</mosaic_0001>

<bundles_post_ra>
// kernel: tpu_custom_call.1
= control target key start
LH: loop header
LB: loop body
LE: loop exit
PB: predicated region body
PF: predicated region fallthrough
CT: control target
= control target key end

     0   :  { %7 = vsyncpa [#allocation3], 0  ;;  %s320_s0 = inlined_call_operand.hbm [shape: f32[8,256], index: 0, kind: input, shape index: {}]   ;;  %s321_s1 = inlined_call_operand.hbm [shape: f32[256,256], index: 1, kind: input, shape index: {}]   ;;  %s322_s2 = inlined_call_operand.hbm [shape: f32[8,256], index: 2, kind: output, shape index: {}]  }
   0x1   :  { %8 = vsyncpa [#allocation6], 0 }
   0x2   :  { %9 = vsyncpa [#allocation4], 0  ;;  %s15_s11 = sshll.u32 %s320_s0, 4  ;;  %s291_s12 = smov [#allocation2]   ;;  %s16_s11 = int_to_ptr.hbm [resolvable:$true] %s15_s11 }
   0x3   :  { %s17_s13 = sshll.u32 %s291_s12, 4  ;;  %s25_s16 = sshll.u32 %s321_s1, 4  ;;  %s18_s13 = int_to_ptr.vmem [resolvable:$true] %s17_s13  ;;  %s26_s16 = int_to_ptr.hbm [resolvable:$true] %s25_s16 }
   0x4   :  { %20 = dma.hbm_to_vmem [thread:$0]  %s16_s11, 256, %s18_s13, [#allocation3]  }
   0x5   :  { %s292_s17 = smov [#allocation5]   ;;  %s293_s19 = smov 256  }
   0x6   :  { %s27_s18 = sshll.u32 %s292_s17, 4  ;;  %s294_s20 = smov 16   ;;  %s28_s18 = int_to_ptr.vmem [resolvable:$true] %s27_s18 }
   0x7   :  { %33 = dma.hbm_to_vmem [thread:$0]  %s26_s16, 8192, %s28_s18, [#allocation6], %s293_s19, %s293_s19, %s294_s20  }
   0x8   :  { %285 = dma.done.wait [#allocation3], 256  }
   0x9   :  { %286 = vsyncadd [#allocation3], 4294967040 }
   0xa   :  { %287 = dma.done.wait [#allocation6], 8192  }
   0xb   :  { %288 = vsyncadd [#allocation6], 4294959104  ;;  %v75_v0 = vld [vmem:[#allocation5 + $0xf8] sm:$0xff]  ;;  %v73_v2 = vld [vmem:[#allocation5 + $0xe8] sm:$0xff]  ;;  %s295_s0 = smov [#allocation7]   ;;  %s197_s23 = sshll.u32 %s322_s2, 4  ;;  %s198_s23 = int_to_ptr.hbm [resolvable:$true] %s197_s23 }
   0xc   :  { %v107_v1 = vld [vmem:[#allocation5 + $0x1f8] sm:$0xff]  ;;  %148 = vmatpush.msra.mxu2 %v75_v0  ;;  %v105_v3 = vld [vmem:[#allocation5 + $0x1e8] sm:$0xff]  ;;  %v74_v6 = vld [vmem:[#allocation5 + $0xf0] sm:$0xff]  ;;  %s195_s1 = sshll.u32 %s295_s0, 4  ;;  %s196_s1 = int_to_ptr.vmem [resolvable:$true] %s195_s1 }
   0xd   :  { %168 = vmatpush.msra.mxu3 %v107_v1  ;;  %v71_v4 = vld [vmem:[#allocation5 + $0xd8] sm:$0xff]  ;;  %v106_v7 = vld [vmem:[#allocation5 + $0x1f0] sm:$0xff]  ;;  %v72_v8 = vld [vmem:[#allocation5 + $0xe0] sm:$0xff]  ;;  %108 = vmatpush.msra.mxu0 %v74_v6 }
   0xe   :  { %v103_v5 = vld [vmem:[#allocation5 + $0x1d8] sm:$0xff]  ;;  %149 = vmatpush.msra.mxu2 %v73_v2  ;;  %v104_v9 = vld [vmem:[#allocation5 + $0x1e0] sm:$0xff]  ;;  %128 = vmatpush.msra.mxu1 %v106_v7  ;;  %v69_v10 = vld [vmem:[#allocation5 + $0xc8] sm:$0xff] }
   0xf   :  { %169 = vmatpush.msra.mxu3 %v105_v3  ;;  %v101_v11 = vld [vmem:[#allocation5 + $0x1c8] sm:$0xff]  ;;  %v70_v12 = vld [vmem:[#allocation5 + $0xd0] sm:$0xff]  ;;  %109 = vmatpush.msra.mxu0 %v72_v8  ;;  %v67_v14 = vld [vmem:[#allocation5 + $0xb8] sm:$0xff] }
  0x10   :  { %150 = vmatpush.msra.mxu2 %v71_v4  ;;  %v102_v13 = vld [vmem:[#allocation5 + $0x1d0] sm:$0xff]  ;;  %129 = vmatpush.msra.mxu1 %v104_v9  ;;  %v99_v15 = vld [vmem:[#allocation5 + $0x1b8] sm:$0xff]  ;;  %v68_v16 = vld [vmem:[#allocation5 + $0xc0] sm:$0xff] }
  0x11   :  { %170 = vmatpush.msra.mxu3 %v103_v5  ;;  %v100_v17 = vld [vmem:[#allocation5 + $0x1c0] sm:$0xff]  ;;  %110 = vmatpush.msra.mxu0 %v70_v12  ;;  %v65_v18 = vld [vmem:[#allocation5 + $0xa8] sm:$0xff]  ;;  %v66_v20 = vld [vmem:[#allocation5 + $0xb0] sm:$0xff] }
  0x12   :  { %151 = vmatpush.msra.mxu2 %v69_v10  ;;  %130 = vmatpush.msra.mxu1 %v102_v13  ;;  %v97_v19 = vld [vmem:[#allocation5 + $0x1a8] sm:$0xff]  ;;  %v98_v21 = vld [vmem:[#allocation5 + $0x1b0] sm:$0xff]  ;;  %v63_v22 = vld [vmem:[#allocation5 + $0x98] sm:$0xff] }
  0x13   :  { %171 = vmatpush.msra.mxu3 %v101_v11  ;;  %111 = vmatpush.msra.mxu0 %v68_v16  ;;  %v95_v23 = vld [vmem:[#allocation5 + $0x198] sm:$0xff]  ;;  %v64_v24 = vld [vmem:[#allocation5 + $0xa0] sm:$0xff]  ;;  %v61_v26 = vld [vmem:[#allocation5 + $0x88] sm:$0xff] }
  0x14   :  { %152 = vmatpush.msra.mxu2 %v67_v14  ;;  %131 = vmatpush.msra.mxu1 %v100_v17  ;;  %v96_v25 = vld [vmem:[#allocation5 + $0x1a0] sm:$0xff]  ;;  %v93_v27 = vld [vmem:[#allocation5 + $0x188] sm:$0xff]  ;;  %v62_v28 = vld [vmem:[#allocation5 + $0x90] sm:$0xff] }
  0x15   :  { %172 = vmatpush.msra.mxu3 %v99_v15  ;;  %112 = vmatpush.msra.mxu0 %v66_v20  ;;  %v94_v29 = vld [vmem:[#allocation5 + $0x190] sm:$0xff]  ;;  %v59_v30 = vld [vmem:[#allocation5 + $0x78] sm:$0xff]  ;;  %v60_v32 = vld [vmem:[#allocation5 + $0x80] sm:$0xff] }
  0x16   :  { %153 = vmatpush.msra.mxu2 %v65_v18  ;;  %132 = vmatpush.msra.mxu1 %v98_v21  ;;  %v91_v31 = vld [vmem:[#allocation5 + $0x178] sm:$0xff]  ;;  %v92_v33 = vld [vmem:[#allocation5 + $0x180] sm:$0xff]  ;;  %v57_v34 = vld [vmem:[#allocation5 + $0x68] sm:$0xff] }
  0x17   :  { %173 = vmatpush.msra.mxu3 %v97_v19  ;;  %113 = vmatpush.msra.mxu0 %v64_v24  ;;  %v89_v35 = vld [vmem:[#allocation5 + $0x168] sm:$0xff]  ;;  %v58_v36 = vld [vmem:[#allocation5 + $0x70] sm:$0xff]  ;;  %v55_v38 = vld [vmem:[#allocation5 + $0x58] sm:$0xff] }
  0x18   :  { %154 = vmatpush.msra.mxu2 %v63_v22  ;;  %133 = vmatpush.msra.mxu1 %v96_v25  ;;  %v90_v37 = vld [vmem:[#allocation5 + $0x170] sm:$0xff]  ;;  %v87_v39 = vld [vmem:[#allocation5 + $0x158] sm:$0xff]  ;;  %v56_v40 = vld [vmem:[#allocation5 + $0x60] sm:$0xff] }
  0x19   :  { %174 = vmatpush.msra.mxu3 %v95_v23  ;;  %114 = vmatpush.msra.mxu0 %v62_v28  ;;  %v88_v41 = vld [vmem:[#allocation5 + $0x160] sm:$0xff]  ;;  %v53_v42 = vld [vmem:[#allocation5 + $0x48] sm:$0xff]  ;;  %v54_v44 = vld [vmem:[#allocation5 + $0x50] sm:$0xff] }
  0x1a   :  { %155 = vmatpush.msra.mxu2 %v61_v26  ;;  %134 = vmatpush.msra.mxu1 %v94_v29  ;;  %v85_v43 = vld [vmem:[#allocation5 + $0x148] sm:$0xff]  ;;  %v86_v45 = vld [vmem:[#allocation5 + $0x150] sm:$0xff]  ;;  %v51_v46 = vld [vmem:[#allocation5 + $0x38] sm:$0xff] }
  0x1b   :  { %175 = vmatpush.msra.mxu3 %v93_v27  ;;  %115 = vmatpush.msra.mxu0 %v60_v32  ;;  %v83_v47 = vld [vmem:[#allocation5 + $0x138] sm:$0xff]  ;;  %v52_v48 = vld [vmem:[#allocation5 + $0x40] sm:$0xff]  ;;  %v49_v50 = vld [vmem:[#allocation5 + $0x28] sm:$0xff] }
  0x1c   :  { %156 = vmatpush.msra.mxu2 %v59_v30  ;;  %135 = vmatpush.msra.mxu1 %v92_v33  ;;  %v84_v49 = vld [vmem:[#allocation5 + $0x140] sm:$0xff]  ;;  %v81_v51 = vld [vmem:[#allocation5 + $0x128] sm:$0xff]  ;;  %v50_v52 = vld [vmem:[#allocation5 + $0x30] sm:$0xff] }
  0x1d   :  { %176 = vmatpush.msra.mxu3 %v91_v31  ;;  %116 = vmatpush.msra.mxu0 %v58_v36  ;;  %v82_v53 = vld [vmem:[#allocation5 + $0x130] sm:$0xff]  ;;  %v47_v54 = vld [vmem:[#allocation5 + $0x18] sm:$0xff]  ;;  %v48_v56 = vld [vmem:[#allocation5 + $0x20] sm:$0xff] }
  0x1e   :  { %157 = vmatpush.msra.mxu2 %v57_v34  ;;  %136 = vmatpush.msra.mxu1 %v90_v37  ;;  %v79_v55 = vld [vmem:[#allocation5 + $0x118] sm:$0xff]  ;;  %v80_v57 = vld [vmem:[#allocation5 + $0x120] sm:$0xff]  ;;  %v45_v58 = vld [vmem:[#allocation5 + $0x8] sm:$0xff] }
  0x1f   :  { %177 = vmatpush.msra.mxu3 %v89_v35  ;;  %117 = vmatpush.msra.mxu0 %v56_v40  ;;  %v77_v59 = vld [vmem:[#allocation5 + $0x108] sm:$0xff]  ;;  %v42_v60 = vld [vmem:[#allocation2] sm:$0xff]  ;;  %v43_v61 = vld [vmem:[#allocation2 + $0x8] sm:$0xff] }
  0x20   :  { %158 = vmatpush.msra.mxu2 %v55_v38  ;;  %137 = vmatpush.msra.mxu1 %v88_v41  ;;  %v46_v62 = vld [vmem:[#allocation5 + $0x10] sm:$0xff]  ;;  %v44_v0 = vld [vmem:[#allocation5] sm:$0xff] }
  0x21   :  { %178 = vmatpush.msra.mxu3 %v87_v39  ;;  %118 = vmatpush.msra.mxu0 %v54_v44  ;;  %v78_v63 = vld [vmem:[#allocation5 + $0x110] sm:$0xff]  ;;  %v76_v1 = vld [vmem:[#allocation5 + $0x100] sm:$0xff] }
  0x22   :  { %159 = vmatpush.msra.mxu2 %v53_v42  ;;  %138 = vmatpush.msra.mxu1 %v86_v45 }
  0x23   :  { %179 = vmatpush.msra.mxu3 %v85_v43  ;;  %119 = vmatpush.msra.mxu0 %v52_v48 }
  0x24   :  { %160 = vmatpush.msra.mxu2 %v51_v46  ;;  %139 = vmatpush.msra.mxu1 %v84_v49 }
  0x25   :  { %180 = vmatpush.msra.mxu3 %v83_v47  ;;  %120 = vmatpush.msra.mxu0 %v50_v52 }
  0x26   :  { %161 = vmatpush.msra.mxu2 %v49_v50  ;;  %140 = vmatpush.msra.mxu1 %v82_v53 }
  0x27   :  { %181 = vmatpush.msra.mxu3 %v81_v51  ;;  %121 = vmatpush.msra.mxu0 %v48_v56 }
  0x28   :  { %162 = vmatpush.msra.mxu2 %v47_v54  ;;  %141 = vmatpush.msra.mxu1 %v80_v57 }
  0x29   :  { %182 = vmatpush.msra.mxu3 %v79_v55  ;;  %122 = vmatpush.msra.mxu0 %v46_v62 }
  0x2a   :  { %163 = vmatpush.msra.mxu2 %v45_v58  ;;  %142 = vmatpush.msra.mxu1 %v78_v63 }
  0x2b   :  { %183 = vmatpush.msra.mxu3 %v77_v59  ;;  %164 = vmatmul.f32.vlgmr.msra.gmra.mxu2 %v42_v60 }
  0x2c   :  { %184 = vmatmul.f32.vlgmr.msra.gmra.mxu3 %v43_v61  ;;  %123 = vmatpush.msra.mxu0 %v44_v0 }
  0x2d   :  { %143 = vmatpush.msra.mxu1 %v76_v1  ;;  %124 = vmatmul.f32.vlgmr.msra.gmra.mxu0 %v42_v60 }
  0x2e   :  { %144 = vmatmul.f32.vlgmr.msra.gmra.mxu1 %v43_v61 }
  0xaa   :  { %v125_v2 = vpop.f32.mrf.mxu0 }
  0xab   :  { %v145_v3 = vpop.f32.mrf.mxu1 }
  0xac   :  { %v146_v4 = vadd.f32 %v145_v3, %v125_v2 }
  0xae   :  { %v165_v5 = vpop.f32.mrf.mxu2  ;;  %188 = vst [vmem:[#allocation7] sm:$0xff] %v146_v4 }
  0xaf   :  { %v185_v6 = vpop.f32.mrf.mxu3 }
  0xb0   :  { %v186_v7 = vadd.f32 %v185_v6, %v165_v5 }
  0xb2   :  { %189 = vst [vmem:[#allocation7 + $0x8] sm:$0xff] %v186_v7 }
  0xb3   :  { %200 = dma.vmem_to_hbm [thread:$0]  %s196_s1, 256, %s198_s23, [#allocation4]  }
  0xb4   :  { %289 = dma.done.wait [#allocation4], 256  }
  0xb5   :  { %290 = vsyncadd [#allocation4], 4294967040 }
  0xb6   :  { %205 = vsyncpa [#allocation3], 1 }
  0xb7   :  { %206 = vsyncpa [#allocation6], 1 }
  0xb8   :  { %207 = vsyncpa [#allocation4], 1 }

</bundles_post_ra>
